<compile_context>
chip_gen: v7x
topology: tpu7x:2x2x1
jax: 0.10.0
libtpu: 0.0.40
codegen_flags: <defaults>
</compile_context>

<pallas_src>
import math
import functools

import jax
import jax.numpy as jnp
from jax.experimental import pallas as pl
from jax.experimental.pallas import tpu as pltpu


# ---------------------------------------------------------------------------
# Direct convolution + fused BN statistics (one grid step per batch element)
# ---------------------------------------------------------------------------
def _conv_stats_kernel(x_ref, w_ref, y_ref, sum_ref, sq_ref, *, ks, stride, ho, wo):
    # x_ref: (s, s, Hq, Wq, Cin) bf16   (one batch element, phase-split layout)
    # w_ref: (ks*ks*Cin, Cout)   bf16   (resident across the whole grid)
    s = stride
    slabs = []
    for kh in range(ks):                       # static taps -> static slices
        qh, rh = divmod(kh, s)
        for kw in range(ks):
            qw, rw = divmod(kw, s)
            slab = x_ref[rh, rw, pl.ds(qh, ho), pl.ds(qw, wo), :]    # (ho, wo, Cin)
            slabs.append(slab.reshape(ho * wo, slab.shape[-1]))
    # one deep contraction: K = ks*ks*Cin (instead of ks*ks dots of depth Cin)
    patch = jnp.concatenate(slabs, axis=-1)                          # (ho*wo, ks*ks*Cin)
    acc = jnp.dot(patch, w_ref[...], preferred_element_type=jnp.float32)
    y_ref[...] = acc                                                 # single store
    # fused per-image BN statistics (summed over N in the wrapper)
    sum_ref[...] = jnp.sum(acc, axis=0, keepdims=True)
    sq_ref[...] = jnp.sum(acc * acc, axis=0, keepdims=True)


def conv2d_stats(x_nhwc, w_flat_bf16, ks, stride, pad):
    """x (N,H,W,Cin) f32, w (ks*ks*Cin, Cout) bf16 -> conv output (N, Ho*Wo, Cout) f32
    plus per-batch-element channel sum / sum-of-squares (N, Cout)."""
    N, H, W, Cin = x_nhwc.shape
    Cout = w_flat_bf16.shape[-1]
    s = stride
    Ho = (H + 2 * pad - ks) // s + 1
    Wo = (W + 2 * pad - ks) // s + 1
    Hq = Ho + (ks - 1) // s
    Wq = Wo + (ks - 1) // s
    xp = jnp.pad(x_nhwc, ((0, 0), (pad, Hq * s - H - pad), (pad, Wq * s - W - pad), (0, 0)))
    # phase-split: row = hq*s + rh, col = wq*s + rw  ->  (N, rh, rw, hq, wq, c)
    # for stride==1 the transpose only moves size-1 axes (XLA elides it); the bf16 cast
    # is fused with the pad, so this is a single HBM pass.
    xs = xp.reshape(N, Hq, s, Wq, s, Cin).transpose(0, 2, 4, 1, 3, 5).astype(jnp.bfloat16)

    kernel = functools.partial(_conv_stats_kernel, ks=ks, stride=s, ho=Ho, wo=Wo)
    y, ssum, ssq = pl.pallas_call(
        kernel,
        out_shape=(jax.ShapeDtypeStruct((N, Ho * Wo, Cout), jnp.float32),
                   jax.ShapeDtypeStruct((N, 1, Cout), jnp.float32),
                   jax.ShapeDtypeStruct((N, 1, Cout), jnp.float32)),
        grid_spec=pltpu.PrefetchScalarGridSpec(
            num_scalar_prefetch=0,
            grid=(N,),
            in_specs=[
                pl.BlockSpec((None, s, s, Hq, Wq, Cin),
                             lambda n: (n, 0, 0, 0, 0, 0)),
                # full weight, constant block index -> DMA'd once, stays resident
                pl.BlockSpec((ks * ks * Cin, Cout), lambda n: (0, 0)),
            ],
            out_specs=(pl.BlockSpec((None, Ho * Wo, Cout), lambda n: (n, 0, 0)),
                       pl.BlockSpec((None, 1, Cout), lambda n: (n, 0, 0)),
                       pl.BlockSpec((None, 1, Cout), lambda n: (n, 0, 0))),
        ),
        compiler_params=pltpu.CompilerParams(dimension_semantics=("parallel",)),
    )(xs, w_flat_bf16)
    return y, ssum.reshape(N, Cout), ssq.reshape(N, Cout)


# ---------------------------------------------------------------------------
# BatchNorm helpers (train mode, biased variance)
# ---------------------------------------------------------------------------
def _bn_scale_shift(ch_sum, ch_sq, count, gamma, beta, eps=1e-5):
    mean = ch_sum / count
    var = jnp.maximum(ch_sq / count - mean * mean, 0.0)
    scale = gamma * jax.lax.rsqrt(var + eps)
    shift = beta - mean * scale
    return scale, shift


def _bn_apply_kernel(y_ref, s_ref, t_ref, o_ref, *, slope):
    y = y_ref[...] * s_ref[...] + t_ref[...]
    o_ref[...] = jnp.where(y >= 0.0, y, slope * y)


def bn_apply(y2d, scale, shift, slope=0.1):
    """Normalize + LeakyReLU on a (M, C) channels-last tensor (lane-dense packed view)."""
    M, C = y2d.shape
    if C % 128 == 0:
        R, L, g = M, C, 1
    elif C < 128 and 128 % C == 0 and M % (128 // C) == 0:
        g = 128 // C
        R, L = M // g, 128
    else:
        R, L, g = M, C, 1
    yv = y2d.reshape(R, L)
    s = jnp.tile(scale, g).reshape(1, L).astype(jnp.float32)
    t = jnp.tile(shift, g).reshape(1, L).astype(jnp.float32)
    cap = max(8, ((1 << 20) // (L * 4)) // 8 * 8)   # ~1 MiB blocks (fits v5e/v6e/v7x here)
    TR = R if R <= cap else cap
    out = pl.pallas_call(
        functools.partial(_bn_apply_kernel, slope=slope),
        out_shape=jax.ShapeDtypeStruct((R, L), jnp.float32),
        grid_spec=pltpu.PrefetchScalarGridSpec(
            num_scalar_prefetch=0,
            grid=(pl.cdiv(R, TR),),
            in_specs=[pl.BlockSpec((TR, L), lambda i: (i, 0)),
                      pl.BlockSpec((1, L), lambda i: (0, 0)),
                      pl.BlockSpec((1, L), lambda i: (0, 0))],
            out_specs=pl.BlockSpec((TR, L), lambda i: (i, 0)),
        ),
        compiler_params=pltpu.CompilerParams(dimension_semantics=("parallel",)),
    )(yv, s, t)
    return out.reshape(M, C)


# ---------------------------------------------------------------------------
# Fused q/k/v projection: BN1+LeakyReLU prologue, one GEMM, three bf16 outputs
# ---------------------------------------------------------------------------
def _qkv_kernel(y_ref, s_ref, t_ref, w_ref, b_ref, q_ref, k_ref, v_ref,
                *, c, q_scale, slope):
    y = y_ref[...] * s_ref[...] + t_ref[...]               # BN1 (fused prologue)
    y = jnp.where(y >= 0.0, y, slope * y).astype(jnp.bfloat16)
    z = jnp.dot(y, w_ref[...], preferred_element_type=jnp.float32) + b_ref[...]
    q_ref[...] = (z[:, :c] * q_scale).astype(jnp.bfloat16)  # fold 1/sqrt(C) into q
    k_ref[...] = z[:, c:2 * c].astype(jnp.bfloat16)
    v_ref[...] = z[:, 2 * c:3 * c].astype(jnp.bfloat16)


def qkv_project(y_raw2d, scale1, shift1, w_qkv_bf16, b_qkv, c):
    M = y_raw2d.shape[0]
    TM = M if M <= 512 else 256
    kern = functools.partial(_qkv_kernel, c=c, q_scale=1.0 / math.sqrt(c), slope=0.1)
    q, k, v = pl.pallas_call(
        kern,
        out_shape=tuple(jax.ShapeDtypeStruct((M, c), jnp.bfloat16) for _ in range(3)),
        grid_spec=pltpu.PrefetchScalarGridSpec(
            num_scalar_prefetch=0,
            grid=(pl.cdiv(M, TM),),
            in_specs=[pl.BlockSpec((TM, c), lambda i: (i, 0)),
                      pl.BlockSpec((1, c), lambda i: (0, 0)),
                      pl.BlockSpec((1, c), lambda i: (0, 0)),
                      pl.BlockSpec((c, 3 * c), lambda i: (0, 0)),     # resident weights
                      pl.BlockSpec((1, 3 * c), lambda i: (0, 0))],
            out_specs=tuple(pl.BlockSpec((TM, c), lambda i: (i, 0)) for _ in range(3)),
        ),
        compiler_params=pltpu.CompilerParams(dimension_semantics=("parallel",)),
    )(y_raw2d, scale1.reshape(1, c), shift1.reshape(1, c),
      w_qkv_bf16, b_qkv.reshape(1, 3 * c))
    return q, k, v


# ---------------------------------------------------------------------------
# Attention core (query-tiled, key-tiled with an f32 accumulator)
# ---------------------------------------------------------------------------
def _attn_kernel(q_ref, k_ref, v_ref, o_ref, acc_ref):
    kv = pl.program_id(1)

    @pl.when(kv == 0)
    def _():
        acc_ref[...] = jnp.zeros_like(acc_ref)

    # q already carries the 1/sqrt(C) scale (folded into the qkv GEMM epilogue)
    t = jnp.einsum('nqc,nkc->nqk', q_ref[...], k_ref[...],
                   preferred_element_type=jnp.float32)
    # torch.nn.functional.softmax with implicit dim on a 3-D tensor -> dim=0 (batch);
    # normalization is per (q,k) element over N, so key tiling needs no online softmax.
    m = jnp.max(t, axis=0, keepdims=True)
    e = jnp.exp(t - m)
    z = jnp.sum(e, axis=0, keepdims=True)
    # TODO(synk): pl.reciprocal(z, approx=True) would move this divide onto the EUP slot.
    p = (e / z).astype(v_ref.dtype)
    acc_ref[...] += jnp.einsum('nqk,nkc->nqc', p, v_ref[...],
                               preferred_element_type=jnp.float32)

    @pl.when(kv == pl.num_programs(1) - 1)
    def _():
        o_ref[...] = acc_ref[...]


def attention_core(q, k, v):
    N, HW, C = q.shape
    TQ = HW if HW <= 512 else 256
    TK = HW if HW <= 512 else 512         # bounds K/V residency + logits for v7x VMEM
    return pl.pallas_call(
        _attn_kernel,
        out_shape=jax.ShapeDtypeStruct((N, HW, C), jnp.float32),
        grid_spec=pltpu.PrefetchScalarGridSpec(
            num_scalar_prefetch=0,
            grid=(pl.cdiv(HW, TQ), pl.cdiv(HW, TK)),
            in_specs=[pl.BlockSpec((N, TQ, C), lambda i, j: (0, i, 0)),
                      pl.BlockSpec((N, TK, C), lambda i, j: (0, j, 0)),
                      pl.BlockSpec((N, TK, C), lambda i, j: (0, j, 0))],
            out_specs=pl.BlockSpec((N, TQ, C), lambda i, j: (0, i, 0)),
            scratch_shapes=[pltpu.VMEM((N, TQ, C), jnp.float32)],
        ),
        compiler_params=pltpu.CompilerParams(
            dimension_semantics=("parallel", "arbitrary")),
    )(q, k, v)


# ---------------------------------------------------------------------------
# Residual add (recomputed BN1+LeakyReLU) + fused BN2 statistics
# ---------------------------------------------------------------------------
def _resid_stats_kernel(y_ref, s_ref, t_ref, a_ref, r_ref, sum_ref, sq_ref,
                        *, slope, rows_total, block_rows, need_mask):
    i = pl.program_id(0)

    @pl.when(i == 0)
    def _():
        sum_ref[...] = jnp.zeros_like(sum_ref)
        sq_ref[...] = jnp.zeros_like(sq_ref)

    y = y_ref[...] * s_ref[...] + t_ref[...]     # recompute BN1+LeakyReLU (cheap, saves
    y = jnp.where(y >= 0.0, y, slope * y)        # an HBM round-trip of the normalized act)
    r = y + a_ref[...]
    r_ref[...] = r
    if need_mask:                                # static: traced only for partial blocks
        rid = jax.lax.broadcasted_iota(jnp.int32, r.shape, 0)
        r = jnp.where(rid < rows_total - i * block_rows, r, 0.0)
    sum_ref[...] += jnp.sum(r, axis=0, keepdims=True)
    sq_ref[...] += jnp.sum(r * r, axis=0, keepdims=True)


def residual_bn_stats(y_raw2d, scale1, shift1, att_t2d, slope=0.1):
    M, C = y_raw2d.shape
    cap = max(8, ((1 << 20) // (C * 4)) // 8 * 8)
    TR = M if M <= cap else cap
    need_mask = (M % TR) != 0
    kern = functools.partial(_resid_stats_kernel, slope=slope, rows_total=M,
                             block_rows=TR, need_mask=need_mask)
    r, ssum, ssq = pl.pallas_call(
        kern,
        out_shape=(jax.ShapeDtypeStruct((M, C), jnp.float32),
                   jax.ShapeDtypeStruct((1, C), jnp.float32),
                   jax.ShapeDtypeStruct((1, C), jnp.float32)),
        grid_spec=pltpu.PrefetchScalarGridSpec(
            num_scalar_prefetch=0,
            grid=(pl.cdiv(M, TR),),
            in_specs=[pl.BlockSpec((TR, C), lambda i: (i, 0)),
                      pl.BlockSpec((1, C), lambda i: (0, 0)),
                      pl.BlockSpec((1, C), lambda i: (0, 0)),
                      pl.BlockSpec((TR, C), lambda i: (i, 0))],
            out_specs=(pl.BlockSpec((TR, C), lambda i: (i, 0)),
                       pl.BlockSpec((1, C), lambda i: (0, 0)),
                       pl.BlockSpec((1, C), lambda i: (0, 0))),
        ),
        compiler_params=pltpu.CompilerParams(dimension_semantics=("arbitrary",)),
    )(y_raw2d, scale1.reshape(1, C), shift1.reshape(1, C), att_t2d)
    return r, ssum.reshape(C), ssq.reshape(C)


# ---------------------------------------------------------------------------
# ConvBlock forward (NCHW in / NCHW out, like the PyTorch module)
# ---------------------------------------------------------------------------
def conv_block_forward(x_nchw, p):
    x = jnp.transpose(x_nchw, (0, 2, 3, 1))                           # NHWC
    N, H, W, _ = x.shape
    ks, s, pad = p['ks'], p['stride'], p['pad']
    C = p['gamma'].shape[0]
    Ho = (H + 2 * pad - ks) // s + 1
    Wo = (W + 2 * pad - ks) // s + 1
    M = N * Ho * Wo

    # conv (+ fused BN statistics); conv bias omitted: train-mode BN's batch-mean
    # subtraction cancels a per-channel bias exactly.
    y, nsum, nsq = conv2d_stats(x, p['w_k'], ks, s, pad)               # (N, Ho*Wo, C)
    scale1, shift1 = _bn_scale_shift(nsum.sum(0), nsq.sum(0), float(M),
                                     p['gamma'], p['beta'])
    y2d = y.reshape(M, C)

    if 'w_qkv_k' not in p:
        out = bn_apply(y2d, scale1, shift1)
        return jnp.transpose(out.reshape(N, Ho, Wo, C), (0, 3, 1, 2))

    # attention path: BN1+LeakyReLU is applied as a prologue inside the q/k/v GEMM and
    # recomputed inside the residual kernel; the normalized tensor never hits HBM alone.
    q, k, v = qkv_project(y2d, scale1, shift1, p['w_qkv_k'], p['b_qkv_k'], C)
    att = attention_core(q.reshape(N, Ho * Wo, C),
                         k.reshape(N, Ho * Wo, C),
                         v.reshape(N, Ho * Wo, C))
    # bug-compatible raw (N,HW,C)->(N,C,H,W) reinterpret of the reference, then back to
    # NHWC for the channels-last residual/BN kernels (one small XLA transpose).
    att_t = jnp.transpose(att.reshape(N, C, Ho, Wo), (0, 2, 3, 1)).reshape(M, C)
    r, rsum, rsq = residual_bn_stats(y2d, scale1, shift1, att_t)
    scale2, shift2 = _bn_scale_shift(rsum, rsq, float(M), p['gamma2'], p['beta2'])
    out = bn_apply(r, scale2, shift2)
    return jnp.transpose(out.reshape(N, Ho, Wo, C), (0, 3, 1, 2))


def init_conv_block_params(key, cin, cout, ks, stride, pad, attention):
    kk = jax.random.split(key, 12)
    fan = cin * ks * ks
    w = jax.random.normal(kk[0], (ks, ks, cin, cout), jnp.float32) / math.sqrt(fan)
    p = dict(
        ks=ks, stride=stride, pad=pad,
        w=w,                                                          # f32 (reference)
        b=jax.random.normal(kk[1], (cout,), jnp.float32) * 0.01,      # cancelled by BN
        gamma=1.0 + 0.1 * jax.random.normal(kk[2], (cout,), jnp.float32),
        beta=0.1 * jax.random.normal(kk[3], (cout,), jnp.float32),
        # kernel-ready: rows ordered (kh, kw, cin) == in-kernel im2col column order
        w_k=w.reshape(ks * ks * cin, cout).astype(jnp.bfloat16),
    )
    if attention:
        sd = 1.0 / math.sqrt(cout)
        wq = jax.random.normal(kk[4], (cout, cout), jnp.float32) * sd
        wk = jax.random.normal(kk[5], (cout, cout), jnp.float32) * sd
        wv = jax.random.normal(kk[6], (cout, cout), jnp.float32) * sd
        bq = jax.random.normal(kk[7], (cout,), jnp.float32) * 0.01
        bk = jax.random.normal(kk[8], (cout,), jnp.float32) * 0.01
        bv = jax.random.normal(kk[9], (cout,), jnp.float32) * 0.01
        p.update(
            wq=wq, wk=wk, wv=wv, bq=bq, bk=bk, bv=bv,                  # f32 (reference)
            gamma2=1.0 + 0.1 * jax.random.normal(kk[10], (cout,), jnp.float32),
            beta2=0.1 * jax.random.normal(kk[11], (cout,), jnp.float32),
            w_qkv_k=jnp.concatenate([wq, wk, wv], axis=1).astype(jnp.bfloat16),  # (C,3C)
            b_qkv_k=jnp.concatenate([bq, bk, bv]).astype(jnp.float32),           # (3C,)
        )
    return p


# ---------------------------------------------------------------------------
# Pure-JAX reference (mirrors the PyTorch module).  All contractions run in f32 on
# bf16-rounded operands, matching the kernels' MXU numerics while avoiding
# bf16 x bf16 -> f32 dots that some backends reject outside jit.
# ---------------------------------------------------------------------------
def _r(x):
    return x.astype(jnp.bfloat16).astype(jnp.float32)


def _bn_lrelu_ref(y_nchw, gamma, beta, eps=1e-5, slope=0.1):
    mean = jnp.mean(y_nchw, axis=(0, 2, 3), keepdims=True)
    var = jnp.mean(jnp.square(y_nchw - mean), axis=(0, 2, 3), keepdims=True)
    y = (y_nchw - mean) / jnp.sqrt(var + eps)
    y = y * gamma[None, :, None, None] + beta[None, :, None, None]
    return jnp.where(y >= 0.0, y, slope * y)


def conv_block_ref(x_nchw, p):
    w_oihw = jnp.transpose(p['w'], (3, 2, 0, 1))
    y = jax.lax.conv_general_dilated(
        _r(x_nchw), _r(w_oihw),
        window_strides=(p['stride'], p['stride']),
        padding=[(p['pad'], p['pad']), (p['pad'], p['pad'])],
        dimension_numbers=('NCHW', 'OIHW', 'NCHW'),
        preferred_element_type=jnp.float32)
    y = y + p['b'][None, :, None, None]
    y = _bn_lrelu_ref(y, p['gamma'], p['beta'])
    if 'wq' in p:
        N, C, H, W = y.shape
        yb = _r(y)

        def proj(wm, bias):
            o = jnp.einsum('nchw,cd->ndhw', yb, _r(wm),
                           preferred_element_type=jnp.float32)
            o = o + bias[None, :, None, None]
            return o.reshape(N, C, H * W).transpose(0, 2, 1)          # (N, HW, C)

        qm = proj(p['wq'], p['bq'])
        km = proj(p['wk'], p['bk'])
        vm = proj(p['wv'], p['bv'])
        t = jnp.einsum('nqc,nkc->nqk', _r(qm), _r(km),
                       preferred_element_type=jnp.float32) / math.sqrt(C)
        sm = jax.nn.softmax(t, axis=0)             # legacy implicit dim=0 for 3-D input
        att = jnp.einsum('nqk,nkc->nqc', _r(sm), _r(vm),
                         preferred_element_type=jnp.float32)
        y = y + att.reshape(N, C, H, W)            # raw reshape, as in the reference
        y = _bn_lrelu_ref(y, p['gamma2'], p['beta2'])
    return y


if __name__ == "__main__":
    root = jax.random.PRNGKey(0)
    kx, k1, k2 = jax.random.split(root, 3)
    x = jax.random.normal(kx, (2, 4, 16, 16), jnp.float32)             # NCHW, like PyTorch

    p1 = init_conv_block_params(k1, 4, 32, ks=3, stride=2, pad=1, attention=False)
    p2 = init_conv_block_params(k2, 32, 64, ks=3, stride=1, pad=1, attention=True)

    block1 = jax.jit(lambda inp: conv_block_forward(inp, p1))
    block2 = jax.jit(lambda inp: conv_block_forward(inp, p2))

    y1 = block1(x)
    y2 = block2(y1)
    jax.block_until_ready((y1, y2))

    assert y1.shape == (2, 32, 8, 8), y1.shape
    assert y2.shape == (2, 64, 8, 8), y2.shape
    assert bool(jnp.isfinite(y2).all())

    # correctness check against a pure-JAX reference of the PyTorch module
    r1 = conv_block_ref(x, p1)
    r2 = conv_block_ref(y1, p2)
    e1 = float(jnp.max(jnp.abs(y1 - r1)))
    e2 = float(jnp.max(jnp.abs(y2 - r2)))
    assert e1 < 2e-2 and e2 < 2e-2, (e1, e2)

    print("KERNEL_OK")
</pallas_src>

<mosaic_0001>
module attributes {stable_mosaic.version = 11 : i64} {
  func.func @_conv_stats_kernel(%arg0: i32, %arg1: memref<1x2x2x9x9x4xbf16, #tpu.memory_space<vmem>>, %arg2: memref<36x32xbf16, #tpu.memory_space<vmem>>, %arg3: memref<1x64x32xf32, #tpu.memory_space<vmem>>, %arg4: memref<1x1x32xf32, #tpu.memory_space<vmem>>, %arg5: memref<1x1x32xf32, #tpu.memory_space<vmem>>) attributes {dimension_semantics = [#tpu.dimension_semantics<parallel>], iteration_bounds = array<i64: 2>, scalar_prefetch = 0 : i64, scratch_operands = 0 : i64, tpu.core_type = #tpu.core_type<tc>, window_params = [{transform_indices = @transform_0, window_bounds = array<i64: 1, 2, 2, 9, 9, 4>}, {pipeline_mode = #tpu.pipeline_mode<synchronous>, transform_indices = @transform_1, window_bounds = array<i64: 36, 32>}, {transform_indices = @transform_2, window_bounds = array<i64: 1, 64, 32>}, {transform_indices = @transform_3, window_bounds = array<i64: 1, 1, 32>}, {transform_indices = @transform_4, window_bounds = array<i64: 1, 1, 32>}]} {
    %c0 = arith.constant 0 : index
    %c0_0 = arith.constant 0 : index
    %c0_1 = arith.constant 0 : index
    %c0_2 = arith.constant 0 : index
    %c0_3 = arith.constant 0 : index
    %c0_4 = arith.constant 0 : index
    %0 = vector.load %arg1[%c0, %c0_0, %c0_1, %c0_2, %c0_3, %c0_4] : memref<1x2x2x9x9x4xbf16, #tpu.memory_space<vmem>>, vector<1x1x1x8x8x4xbf16>
    %1 = vector.shape_cast %0 : vector<1x1x1x8x8x4xbf16> to vector<8x8x4xbf16>
    %2 = vector.shape_cast %1 : vector<8x8x4xbf16> to vector<64x4xbf16>
    %c0_5 = arith.constant 0 : index
    %c0_6 = arith.constant 0 : index
    %c1 = arith.constant 1 : index
    %c0_7 = arith.constant 0 : index
    %c0_8 = arith.constant 0 : index
    %c0_9 = arith.constant 0 : index
    %3 = vector.load %arg1[%c0_5, %c0_6, %c1, %c0_7, %c0_8, %c0_9] : memref<1x2x2x9x9x4xbf16, #tpu.memory_space<vmem>>, vector<1x1x1x8x8x4xbf16>
    %4 = vector.shape_cast %3 : vector<1x1x1x8x8x4xbf16> to vector<8x8x4xbf16>
    %5 = vector.shape_cast %4 : vector<8x8x4xbf16> to vector<64x4xbf16>
    %c0_10 = arith.constant 0 : index
    %c0_11 = arith.constant 0 : index
    %c0_12 = arith.constant 0 : index
    %c0_13 = arith.constant 0 : index
    %c1_14 = arith.constant 1 : index
    %c0_15 = arith.constant 0 : index
    %6 = vector.load %arg1[%c0_10, %c0_11, %c0_12, %c0_13, %c1_14, %c0_15] : memref<1x2x2x9x9x4xbf16, #tpu.memory_space<vmem>>, vector<1x1x1x8x8x4xbf16>
    %7 = vector.shape_cast %6 : vector<1x1x1x8x8x4xbf16> to vector<8x8x4xbf16>
    %8 = vector.shape_cast %7 : vector<8x8x4xbf16> to vector<64x4xbf16>
    %c0_16 = arith.constant 0 : index
    %c1_17 = arith.constant 1 : index
    %c0_18 = arith.constant 0 : index
    %c0_19 = arith.constant 0 : index
    %c0_20 = arith.constant 0 : index
    %c0_21 = arith.constant 0 : index
    %9 = vector.load %arg1[%c0_16, %c1_17, %c0_18, %c0_19, %c0_20, %c0_21] : memref<1x2x2x9x9x4xbf16, #tpu.memory_space<vmem>>, vector<1x1x1x8x8x4xbf16>
    %10 = vector.shape_cast %9 : vector<1x1x1x8x8x4xbf16> to vector<8x8x4xbf16>
    %11 = vector.shape_cast %10 : vector<8x8x4xbf16> to vector<64x4xbf16>
    %c0_22 = arith.constant 0 : index
    %c1_23 = arith.constant 1 : index
    %c1_24 = arith.constant 1 : index
    %c0_25 = arith.constant 0 : index
    %c0_26 = arith.constant 0 : index
    %c0_27 = arith.constant 0 : index
    %12 = vector.load %arg1[%c0_22, %c1_23, %c1_24, %c0_25, %c0_26, %c0_27] : memref<1x2x2x9x9x4xbf16, #tpu.memory_space<vmem>>, vector<1x1x1x8x8x4xbf16>
    %13 = vector.shape_cast %12 : vector<1x1x1x8x8x4xbf16> to vector<8x8x4xbf16>
    %14 = vector.shape_cast %13 : vector<8x8x4xbf16> to vector<64x4xbf16>
    %c0_28 = arith.constant 0 : index
    %c1_29 = arith.constant 1 : index
    %c0_30 = arith.constant 0 : index
    %c0_31 = arith.constant 0 : index
    %c1_32 = arith.constant 1 : index
    %c0_33 = arith.constant 0 : index
    %15 = vector.load %arg1[%c0_28, %c1_29, %c0_30, %c0_31, %c1_32, %c0_33] : memref<1x2x2x9x9x4xbf16, #tpu.memory_space<vmem>>, vector<1x1x1x8x8x4xbf16>
    %16 = vector.shape_cast %15 : vector<1x1x1x8x8x4xbf16> to vector<8x8x4xbf16>
    %17 = vector.shape_cast %16 : vector<8x8x4xbf16> to vector<64x4xbf16>
    %c0_34 = arith.constant 0 : index
    %c0_35 = arith.constant 0 : index
    %c0_36 = arith.constant 0 : index
    %c1_37 = arith.constant 1 : index
    %c0_38 = arith.constant 0 : index
    %c0_39 = arith.constant 0 : index
    %18 = vector.load %arg1[%c0_34, %c0_35, %c0_36, %c1_37, %c0_38, %c0_39] : memref<1x2x2x9x9x4xbf16, #tpu.memory_space<vmem>>, vector<1x1x1x8x8x4xbf16>
    %19 = vector.shape_cast %18 : vector<1x1x1x8x8x4xbf16> to vector<8x8x4xbf16>
    %20 = vector.shape_cast %19 : vector<8x8x4xbf16> to vector<64x4xbf16>
    %c0_40 = arith.constant 0 : index
    %c0_41 = arith.constant 0 : index
    %c1_42 = arith.constant 1 : index
    %c1_43 = arith.constant 1 : index
    %c0_44 = arith.constant 0 : index
    %c0_45 = arith.constant 0 : index
    %21 = vector.load %arg1[%c0_40, %c0_41, %c1_42, %c1_43, %c0_44, %c0_45] : memref<1x2x2x9x9x4xbf16, #tpu.memory_space<vmem>>, vector<1x1x1x8x8x4xbf16>
    %22 = vector.shape_cast %21 : vector<1x1x1x8x8x4xbf16> to vector<8x8x4xbf16>
    %23 = vector.shape_cast %22 : vector<8x8x4xbf16> to vector<64x4xbf16>
    %c0_46 = arith.constant 0 : index
    %c0_47 = arith.constant 0 : index
    %c0_48 = arith.constant 0 : index
    %c1_49 = arith.constant 1 : index
    %c1_50 = arith.constant 1 : index
    %c0_51 = arith.constant 0 : index
    %24 = vector.load %arg1[%c0_46, %c0_47, %c0_48, %c1_49, %c1_50, %c0_51] : memref<1x2x2x9x9x4xbf16, #tpu.memory_space<vmem>>, vector<1x1x1x8x8x4xbf16>
    %25 = vector.shape_cast %24 : vector<1x1x1x8x8x4xbf16> to vector<8x8x4xbf16>
    %26 = vector.shape_cast %25 : vector<8x8x4xbf16> to vector<64x4xbf16>
    %27 = tpu.concatenate %2, %5, %8, %11, %14, %17, %20, %23, %26 in 1 : vector<64x4xbf16>, vector<64x4xbf16>, vector<64x4xbf16>, vector<64x4xbf16>, vector<64x4xbf16>, vector<64x4xbf16>, vector<64x4xbf16>, vector<64x4xbf16>, vector<64x4xbf16> -> vector<64x36xbf16>
    %c0_52 = arith.constant 0 : index
    %c0_53 = arith.constant 0 : index
    %28 = vector.load %arg2[%c0_52, %c0_53] : memref<36x32xbf16, #tpu.memory_space<vmem>>, vector<36x32xbf16>
    %cst = arith.constant dense<0.000000e+00> : vector<64x32xf32>
    %29 = tpu.matmul %27, %28, %cst {dimension_numbers = #tpu.dot_dimension_numbers<[1], [0], [0], [1], [0, 0, 1, 1], [], []>} : vector<64x36xbf16>, vector<36x32xbf16>, vector<64x32xf32> -> vector<64x32xf32>
    %c0_54 = arith.constant 0 : index
    %c0_55 = arith.constant 0 : index
    %c0_56 = arith.constant 0 : index
    %30 = vector.load %arg3[%c0_54, %c0_55, %c0_56] : memref<1x64x32xf32, #tpu.memory_space<vmem>>, vector<1x64x32xf32>
    %31 = vector.shape_cast %30 : vector<1x64x32xf32> to vector<64x32xf32>
    %32 = vector.shape_cast %29 : vector<64x32xf32> to vector<1x64x32xf32>
    tpu.vector_store %arg3[%c0_54, %c0_55, %c0_56], %32 {strides = array<i32>} : memref<1x64x32xf32, #tpu.memory_space<vmem>>, vector<1x64x32xf32>,
    %cst_57 = arith.constant dense<0.000000e+00> : vector<32xf32>
    %33 = vector.multi_reduction <add>, %29, %cst_57 [0] : vector<64x32xf32> to vector<32xf32>
    %34 = vector.shape_cast %33 : vector<32xf32> to vector<1x32xf32>
    %c0_58 = arith.constant 0 : index
    %c0_59 = arith.constant 0 : index
    %c0_60 = arith.constant 0 : index
    %35 = vector.load %arg4[%c0_58, %c0_59, %c0_60] : memref<1x1x32xf32, #tpu.memory_space<vmem>>, vector<1x1x32xf32>
    %36 = vector.shape_cast %35 : vector<1x1x32xf32> to vector<1x32xf32>
    %37 = vector.shape_cast %34 : vector<1x32xf32> to vector<1x1x32xf32>
    tpu.vector_store %arg4[%c0_58, %c0_59, %c0_60], %37 {strides = array<i32>} : memref<1x1x32xf32, #tpu.memory_space<vmem>>, vector<1x1x32xf32>,
    %38 = arith.mulf %29, %29 : vector<64x32xf32>
    %cst_61 = arith.constant dense<0.000000e+00> : vector<32xf32>
    %39 = vector.multi_reduction <add>, %38, %cst_61 [0] : vector<64x32xf32> to vector<32xf32>
    %40 = vector.shape_cast %39 : vector<32xf32> to vector<1x32xf32>
    %c0_62 = arith.constant 0 : index
    %c0_63 = arith.constant 0 : index
    %c0_64 = arith.constant 0 : index
    %41 = vector.load %arg5[%c0_62, %c0_63, %c0_64] : memref<1x1x32xf32, #tpu.memory_space<vmem>>, vector<1x1x32xf32>
    %42 = vector.shape_cast %41 : vector<1x1x32xf32> to vector<1x32xf32>
    %43 = vector.shape_cast %40 : vector<1x32xf32> to vector<1x1x32xf32>
    tpu.vector_store %arg5[%c0_62, %c0_63, %c0_64], %43 {strides = array<i32>} : memref<1x1x32xf32, #tpu.memory_space<vmem>>, vector<1x1x32xf32>,
    return
  }
  func.func @transform_0(%arg0: i32) -> (i32, i32, i32, i32, i32, i32) {
    %c0_i32 = arith.constant 0 : i32
    %c0_i32_0 = arith.constant 0 : i32
    %c0_i32_1 = arith.constant 0 : i32
    %c0_i32_2 = arith.constant 0 : i32
    %c0_i32_3 = arith.constant 0 : i32
    %c0_i32_4 = arith.constant 0 : i32
    return %arg0, %c0_i32, %c0_i32_0, %c0_i32_1, %c0_i32_2, %c0_i32_3 : i32, i32, i32, i32, i32, i32
  }
  func.func @transform_1(%arg0: i32) -> (i32, i32) {
    %c0_i32 = arith.constant 0 : i32
    %c0_i32_0 = arith.constant 0 : i32
    %c0_i32_1 = arith.constant 0 : i32
    return %c0_i32, %c0_i32_0 : i32, i32
  }
  func.func @transform_2(%arg0: i32) -> (i32, i32, i32) {
    %c0_i32 = arith.constant 0 : i32
    %c0_i32_0 = arith.constant 0 : i32
    %c0_i32_1 = arith.constant 0 : i32
    return %arg0, %c0_i32, %c0_i32_0 : i32, i32, i32
  }
  func.func @transform_3(%arg0: i32) -> (i32, i32, i32) {
    %c0_i32 = arith.constant 0 : i32
    %c0_i32_0 = arith.constant 0 : i32
    %c0_i32_1 = arith.constant 0 : i32
    return %arg0, %c0_i32, %c0_i32_0 : i32, i32, i32
  }
  func.func @transform_4(%arg0: i32) -> (i32, i32, i32) {
    %c0_i32 = arith.constant 0 : i32
    %c0_i32_0 = arith.constant 0 : i32
    %c0_i32_1 = arith.constant 0 : i32
    return %arg0, %c0_i32, %c0_i32_0 : i32, i32, i32
  }
}

module attributes {stable_mosaic.version = 11 : i64} {
  func.func @_bn_apply_kernel(%arg0: i32, %arg1: memref<32x128xf32, #tpu.memory_space<vmem>>, %arg2: memref<1x128xf32, #tpu.memory_space<vmem>>, %arg3: memref<1x128xf32, #tpu.memory_space<vmem>>, %arg4: memref<32x128xf32, #tpu.memory_space<vmem>>) attributes {dimension_semantics = [#tpu.dimension_semantics<parallel>], iteration_bounds = array<i64: 1>, scalar_prefetch = 0 : i64, scratch_operands = 0 : i64, tpu.core_type = #tpu.core_type<tc>, window_params = [{transform_indices = @transform_0, window_bounds = array<i64: 32, 128>}, {pipeline_mode = #tpu.pipeline_mode<synchronous>, transform_indices = @transform_1, window_bounds = array<i64: 1, 128>}, {pipeline_mode = #tpu.pipeline_mode<synchronous>, transform_indices = @transform_2, window_bounds = array<i64: 1, 128>}, {transform_indices = @transform_3, window_bounds = array<i64: 32, 128>}]} {
    %c0 = arith.constant 0 : index
    %c0_0 = arith.constant 0 : index
    %0 = vector.load %arg1[%c0, %c0_0] : memref<32x128xf32, #tpu.memory_space<vmem>>, vector<32x128xf32>
    %c0_1 = arith.constant 0 : index
    %c0_2 = arith.constant 0 : index
    %1 = vector.load %arg2[%c0_1, %c0_2] : memref<1x128xf32, #tpu.memory_space<vmem>>, vector<1x128xf32>
    %2 = vector.broadcast %1 : vector<1x128xf32> to vector<32x128xf32>
    %3 = arith.mulf %0, %2 : vector<32x128xf32>
    %c0_3 = arith.constant 0 : index
    %c0_4 = arith.constant 0 : index
    %4 = vector.load %arg3[%c0_3, %c0_4] : memref<1x128xf32, #tpu.memory_space<vmem>>, vector<1x128xf32>
    %5 = vector.broadcast %4 : vector<1x128xf32> to vector<32x128xf32>
    %6 = arith.addf %3, %5 : vector<32x128xf32>
    %cst = arith.constant 0.000000e+00 : f32
    %7 = vector.broadcast %cst : f32 to vector<32x128xf32>
    %8 = arith.cmpf oge, %6, %7 : vector<32x128xf32>
    %cst_5 = arith.constant 1.000000e-01 : f32
    %9 = vector.broadcast %cst_5 : f32 to vector<32x128xf32>
    %10 = arith.mulf %9, %6 : vector<32x128xf32>
    %11 = arith.select %8, %6, %10 : vector<32x128xi1>, vector<32x128xf32>
    %c0_6 = arith.constant 0 : index
    %c0_7 = arith.constant 0 : index
    %12 = vector.load %arg4[%c0_6, %c0_7] : memref<32x128xf32, #tpu.memory_space<vmem>>, vector<32x128xf32>
    tpu.vector_store %arg4[%c0_6, %c0_7], %11 {strides = array<i32>} : memref<32x128xf32, #tpu.memory_space<vmem>>, vector<32x128xf32>,
    return
  }
  func.func @transform_0(%arg0: i32) -> (i32, i32) {
    %c0_i32 = arith.constant 0 : i32
    %c0_i32_0 = arith.constant 0 : i32
    return %arg0, %c0_i32 : i32, i32
  }
  func.func @transform_1(%arg0: i32) -> (i32, i32) {
    %c0_i32 = arith.constant 0 : i32
    %c0_i32_0 = arith.constant 0 : i32
    %c0_i32_1 = arith.constant 0 : i32
    return %c0_i32, %c0_i32_0 : i32, i32
  }
  func.func @transform_2(%arg0: i32) -> (i32, i32) {
    %c0_i32 = arith.constant 0 : i32
    %c0_i32_0 = arith.constant 0 : i32
    %c0_i32_1 = arith.constant 0 : i32
    return %c0_i32, %c0_i32_0 : i32, i32
  }
  func.func @transform_3(%arg0: i32) -> (i32, i32) {
    %c0_i32 = arith.constant 0 : i32
    %c0_i32_0 = arith.constant 0 : i32
    return %arg0, %c0_i32 : i32, i32
  }
}

</mosaic_0001>

<bundles_post_ra>
// kernel: tile.18
= control target key start
LH: loop header
LB: loop body
LE: loop exit
PB: predicated region body
PF: predicated region fallthrough
CT: control target
= control target key end

     0   :  { %s22_s0 = inlined_call_operand.vmem [shape: f32[32], index: 0, kind: input, shape index: {}]   ;;  %s23_s1 = inlined_call_operand.vmem [shape: f32[4,32], index: 1, kind: output, shape index: {}]  }
   0x1   :  { %v4_v0 = vld [vmem:[%s22_s0] ss:$0 sm:$0xff] }
   0x2   :  { %5 = vst [vmem:[%s23_s1] sm:$0xf] %v4_v0 }

// kernel: tile.19
= control target key start
LH: loop header
LB: loop body
LE: loop exit
PB: predicated region body
PF: predicated region fallthrough
CT: control target
= control target key end

     0   :  { %vm7_vm0 = vcmask 261120   ;;  %s37_s8 = smov 32   ;;  %s38_s9 = smov 64   ;;  %vm13_vm1 = vcmask 1048320   ;;  %vm19_vm2 = vcmask 785920   ;;  %vm25_vm3 = vcmask 523520   ;;  %s55_s0 = inlined_call_operand.vmem [shape: f32[4,32], index: 0, kind: input, shape index: {}]   ;;  %s56_s1 = inlined_call_operand.vmem [shape: f32[1,128], index: 1, kind: output, shape index: {}]  }
   0x1   :  { %v4_v0 = vld [vmem:[%s55_s0] sm:$0xf]  ;;  %s36_s0 = smov 96  }
   0x2   :  { %5 = vst [vmem:[#allocation1] sm:$0xf] %v4_v0 }
   0x9   :  { %v10_v1 = vld [vmem:[#allocation1 + $0x3] sm:$0x1]   ;;  %v22_v2 = vld [vmem:[#allocation1 + $0x1] sm:$0x1]   ;;  %v6_v3 = vld [vmem:[#allocation1] sm:$0x1]  }
   0xa   :  { %11 = vrot.lane.b32.xlu0 %v10_v1, %s36_s0  ;;  %23 = vrot.lane.b32.xlu1 %v22_v2, %s37_s8  ;;  %v16_v4 = vld [vmem:[#allocation1 + $0x2] sm:$0x1]   ;;  %8 = vst.msk [vmem:[#allocation0] sm:$0x1] %vm7_vm0, %v6_v3  }
   0xe   :  { %17 = vrot.lane.b32.xlu0 %v16_v4, %s38_s9 }
  0x7c   :  { %v12_v5 = vpop.permute.xlu0 %11   ;;  %v24_v6 = vpop.permute.xlu1 %23  }
  0x7d   :  { %14 = vst.msk [vmem:[#allocation0] sm:$0x1] %vm13_vm1, %v12_v5  }
  0x80   :  { %v18_v7 = vpop.permute.xlu0 %17  }
  0x81   :  { %20 = vst.msk [vmem:[#allocation0] sm:$0x1] %vm19_vm2, %v18_v7  }
  0x82   :  { %26 = vst.msk [vmem:[#allocation0] sm:$0x1] %vm25_vm3, %v24_v6  }
  0x89   :  { %v30_v8 = vld [vmem:[#allocation0] sm:$0x1] }
  0x8a   :  { %32 = vst [vmem:[%s56_s1] sm:$0x1] %v30_v8 }

// kernel: _lambda_.3
= control target key start
LH: loop header
LB: loop body
LE: loop exit
PB: predicated region body
PF: predicated region fallthrough
CT: control target
= control target key end

     0   :  { %s112_s0 = inlined_call_operand.vmem [shape: f32[32,128], index: 0, kind: input, shape index: {}]   ;;  %s113_s1 = inlined_call_operand.vmem [shape: f32[1,128], index: 1, kind: input, shape index: {}]   ;;  %s114_s2 = inlined_call_operand.vmem [shape: f32[1,128], index: 2, kind: input, shape index: {}]   ;;  %s115_s3 = inlined_call_operand.vmem [shape: f32[32,128], index: 3, kind: output, shape index: {}]  }
   0x1   :  { %v14_v0 = vld [vmem:[%s112_s0] sm:$0xff]  ;;  %v15_v4 = vld [vmem:[%s112_s0 + $0x8] sm:$0xff]  ;;  %v16_v5 = vld [vmem:[%s112_s0 + $0x10] sm:$0xff] }
   0x2   :  { %v60_v1 = vld [vmem:[%s113_s1] ss:$0 sm:$0xff]  ;;  %v17_v6 = vld [vmem:[%s112_s0 + $0x18] sm:$0xff] }
   0x3   :  { %v61_v2 = vld [vmem:[%s114_s2] ss:$0 sm:$0xff]  ;;  %v25_v3 = vmul.f32 %v60_v1, %v14_v0  ;;  %v26_v7 = vmul.f32 %v60_v1, %v15_v4  ;;  %v27_v8 = vmul.f32 %v60_v1, %v16_v5  ;;  %v28_v9 = vmul.f32 %v60_v1, %v17_v6 }
   0x5   :  { %v36_v10 = vadd.f32 %v61_v2, %v25_v3  ;;  %v37_v11 = vadd.f32 %v61_v2, %v26_v7  ;;  %v38_v12 = vadd.f32 %v61_v2, %v27_v8  ;;  %v39_v13 = vadd.f32 %v61_v2, %v28_v9 }
   0x7   :  { %vm40_vm0 = vcmp.ge.f32.partialorder %v36_v10, 0.0  ;;  %v44_v14 = vmul.f32 0.1, %v36_v10  ;;  %vm41_vm1 = vcmp.ge.f32.partialorder %v37_v11, 0.0  ;;  %v45_v15 = vmul.f32 0.1, %v37_v11 }
   0x8   :  { %vm42_vm2 = vcmp.ge.f32.partialorder %v38_v12, 0.0  ;;  %v46_v16 = vmul.f32 0.1, %v38_v12  ;;  %vm43_vm3 = vcmp.ge.f32.partialorder %v39_v13, 0.0  ;;  %v47_v18 = vmul.f32 0.1, %v39_v13 }
   0x9   :  { %v48_v17 = vsel %vm40_vm0, %v36_v10, %v44_v14  ;;  %v49_v19 = vsel %vm41_vm1, %v37_v11, %v45_v15 }
   0xa   :  { %52 = vst [vmem:[%s115_s3] sm:$0xff] %v48_v17  ;;  %v50_v20 = vsel %vm42_vm2, %v38_v12, %v46_v16  ;;  %53 = vst [vmem:[%s115_s3 + $0x8] sm:$0xff] %v49_v19  ;;  %v51_v21 = vsel %vm43_vm3, %v39_v13, %v47_v18 }
   0xb   :  { %54 = vst [vmem:[%s115_s3 + $0x10] sm:$0xff] %v50_v20  ;;  %55 = vst [vmem:[%s115_s3 + $0x18] sm:$0xff] %v51_v21 }

// kernel: _lambda_.2
= control target key start
LH: loop header
LB: loop body
LE: loop exit
PB: predicated region body
PF: predicated region fallthrough
CT: control target
= control target key end

     0   :  { %s1416_s15 = smov 0   ;;  %s1770_s0 = inlined_call_operand.vmem [shape: bf16[2,2,2,9,9,4], index: 0, kind: input, shape index: {}]   ;;  %s1771_s1 = inlined_call_operand.vmem [shape: bf16[36,32], index: 1, kind: input, shape index: {}]   ;;  %s1772_s2 = inlined_call_operand.vmem [shape: f32[2,64,32], index: 2, kind: output, shape index: {0}]   ;;  %s1773_s3 = inlined_call_operand.vmem [shape: f32[2,1,32], index: 3, kind: output, shape index: {1}]   ;;  %s1774_s4 = inlined_call_operand.vmem [shape: f32[2,1,32], index: 4, kind: output, shape index: {2}]  }
   0x1 LB: > { %s1192_s16 = sadd.s32 4294967295, %s1381_s15   ;;  %p1196_p0 = scmp.ge.s32.totalorder %s1381_s15, 1  ;;  %s1381_s15 = sphi %s1416_s15, %s15_s15  }
   0x2   : > { %p167_p1 = scmp.lt.s32.totalorder %s1381_s15, 3 }
   0x4   : > { %p168_p2 = pnand %p1196_p0, %p167_p1 }
   0x5   : > { %p199_p3 = scmp.lt.s32.totalorder (!%p168_p2), %s1192_s16, 1  ;;  %s1383_s21 = smov (!%p168_p2), 4   ;;  %vm241_vm0 = vsmask.f32 (!%p168_p2), 3328  ;;  %vm242_vm1 = vsmask.f32 (!%p168_p2), 7440 }
   0x6   : > { %171 = sbr.rel (%p168_p2) target bundleno = 441 (0x1b9), region = 28  ;;  %s1384_s22 = smov (!%p168_p2), 12   ;;  %vm1475_vm2 = vmor (!%p168_p2), %vm241_vm0, %vm242_vm1  ;;  %vm957_vm3 = vcmask (!%p168_p2), 1041408   ;;  %vm852_vm4 = vcmask (!%p168_p2), 31744   ;;  %vm865_vm5 = vcmask (!%p168_p2), 64512   ;;  %vm874_vm6 = vcmask (!%p168_p2), 97280  }
   0x7   : > { %s1385_s23 = smov (!%p168_p2), 16   ;;  %s1386_s26 = smov (!%p168_p2), 8   ;;  %vm883_vm7 = vcmask (!%p168_p2), 130048   ;;  %vm892_vm8 = vcmask (!%p168_p2), 162816   ;;  %vm901_vm9 = vcmask (!%p168_p2), 195584   ;;  %vm910_vm10 = vcmask (!%p168_p2), 228352  }
   0x8   : > { %s1387_s29 = smov (!%p168_p2), 20   ;;  %s1388_s30 = smov (!%p168_p2), 24   ;;  %vm919_vm11 = vcmask (!%p168_p2), 261120   ;;  %vm948_vm12 = vcmask (!%p168_p2), 293888   ;;  %vm1055_vm13 = vcmask (!%p168_p2), 253952  }
   0x9   : > { %s1389_s5 = smov (!%p168_p2), 28   ;;  %s1390_s6 = smov (!%p168_p2), 32  }
   0xd   : > { %s1778_s16 = smov (!%p199_p3, %s1192_s16), 1 }
   0xe   : > { %s1331_s17 = smul.u32 288, %s1778_s16  ;;  %s1301_s9 = sshll.u32 %s1778_s16, 6 }
   0xf   : > { %s1725_s12 = scalar_lea.vmem %s1772_s2, %s1301_s9 }
  0x10   : > { %s1430_s20 = scalar_lea.vmem %s1770_s0, %s1331_s17  ;;  %s211_s17 = scalar_lea.vmem %s1773_s3, %s1778_s16 }
  0x11   : > { %v1348_v0 = vld [vmem:[%s1430_s20 + $0x48] ss:$8 sps:$4 sm:$0xff]   ;;  %v1210_v1 = vld [vmem:[%s1430_s20 + $0xa0] sm:$0xf]  ;;  %v1209_v16 = vld [vmem:[%s1430_s20 + $0x98] sm:$0xf] }
  0x12   : > { %v1211_v2 = vld [vmem:[%s1430_s20 + $0xa8] sm:$0xf]  ;;  %672 = vrot.lane.b32.xlu0 %v1348_v0, %s1383_s21  ;;  %v411_v6 = vshrl.u32 %v1210_v1, 16  ;;  %v414_v7 = vshll.u32 %v1210_v1, 16  ;;  %v1350_v8 = vld [vmem:[%s1430_s20 + $0x58] ss:$8 sps:$4 sm:$0xff]  }
  0x13   : > { %v425_v3 = vshrl.u32 %v1211_v2, 16  ;;  %v428_v4 = vshll.u32 %v1211_v2, 16  ;;  %v1269_v5 = vcombine.low %v1210_v1, %v1211_v2  ;;  %v1351_v13 = vld [vmem:[%s1430_s20 + $0xe8] ss:$8 sps:$4 sm:$0xff]   ;;  %v1443_v19 = vld [vmem:[%s1430_s20] sm:$0xf] }
  0x14   : > { %v413_v11 = vrot.slane %v411_v6, 4  ;;  %v416_v12 = vrot.slane %v414_v7, 5  ;;  %v1208_v14 = vld [vmem:[%s1430_s20 + $0x90] sm:$0xf]  ;;  %v397_v21 = vshrl.u32 %v1209_v16, 16  ;;  %v400_v22 = vshll.u32 %v1209_v16, 16 }
  0x15   : > { %v427_v9 = vrot.slane %v425_v3, 4  ;;  %v430_v10 = vrot.slane %v428_v4, 5  ;;  %722 = vrot.lane.b32.xlu1 %v1269_v5, %s1384_s22  ;;  %v383_v17 = vshrl.u32 %v1208_v14, 16  ;;  %v386_v18 = vshll.u32 %v1208_v14, 16  ;;  %v1446_v24 = vld [vmem:[%s1430_s20 + $0x8] sm:$0xf] }
  0x16   : > { %674 = vrot.lane.b32.xlu0 %v1350_v8, %s1383_s21  ;;  %v417_v20 = vor.u32 %v416_v12, %v413_v11  ;;  %v1268_v23 = vcombine.low %v1208_v14, %v1209_v16  ;;  %v233_v25 = vld [vmem:[%s1430_s20 + $0x4] sm:$0x1]  ;;  %v234_v29 = vld [vmem:[%s1430_s20 + $0xc] sm:$0x1]  ;;  %v245_v30 = vshrl.u32 %v1443_v19, 16  ;;  %v399_v32 = vrot.slane %v397_v21, 4 }
  0x17   : > { %v431_v15 = vor.u32 %v430_v10, %v427_v9  ;;  %v385_v27 = vrot.slane %v383_v17, 4  ;;  %v388_v28 = vrot.slane %v386_v18, 5  ;;  %v402_v33 = vrot.slane %v400_v22, 5  ;;  %v1353_v41 = vld [vmem:[%s1430_s20 + $0xd8] ss:$8 sps:$4 sm:$0xff]  }
  0x18   : > { %v1454_v31 = vrot.slane %v417_v20, 4  ;;  %v248_v34 = vshll.u32 %v1443_v19, 16  ;;  %v247_v35 = vrot.slane %v245_v30, 4  ;;  %v254_v36 = vshll.u32 %v233_v25, 16  ;;  %v1462_v42 = vld [vmem:[%s1430_s20 + $0x10] sm:$0xf] }
  0x19   : > { %v1449_v26 = vrot.slane %v431_v15, 4  ;;  %750 = vrot.lane.b32.xlu1 %v1351_v13, %s1385_s23  ;;  %v259_v37 = vshrl.u32 %v1446_v24, 16  ;;  %v262_v38 = vshll.u32 %v1446_v24, 16  ;;  %v268_v40 = vshll.u32 %v234_v29, 16  ;;  %v1465_v48 = vld [vmem:[%s1430_s20 + $0x18] sm:$0xf] }
  0x1a   : > { %720 = vrot.lane.b32.xlu0 %v1268_v23, %s1384_s22  ;;  %v250_v39 = vrot.slane %v248_v34, 5  ;;  %v389_v43 = vor.u32 %v388_v28, %v385_v27  ;;  %v403_v44 = vor.u32 %v402_v33, %v399_v32  ;;  %v256_v45 = vrot.slane %v254_v36, 5  ;;  %v235_v52 = vld [vmem:[%s1430_s20 + $0x14] sm:$0x1]  ;;  %v236_v53 = vld [vmem:[%s1430_s20 + $0x1c] sm:$0x1] }
  0x1b   : > { %v261_v46 = vrot.slane %v259_v37, 4  ;;  %v264_v47 = vrot.slane %v262_v38, 5  ;;  %v273_v49 = vshrl.u32 %v1462_v42, 16  ;;  %v270_v51 = vrot.slane %v268_v40, 5  ;;  %v1224_v61 = vld [vmem:[%s1430_s20 + $0x94] sm:$0x1] }
  0x1c   : > { %v251_v50 = vor.u32 %v250_v39, %v247_v35  ;;  %v276_v54 = vshll.u32 %v1462_v42, 16  ;;  %v1256_v55 = vcombine.low %v1443_v19, %v1446_v24  ;;  %v282_v59 = vshll.u32 %v235_v52, 16  ;;  %v1225_v2 = vld [vmem:[%s1430_s20 + $0x9c] sm:$0x1]  ;;  %v1226_v7 = vld [vmem:[%s1430_s20 + $0xa4] sm:$0x1] }
  0x1d   : > { %v265_v57 = vor.u32 %v264_v47, %v261_v46  ;;  %v275_v58 = vrot.slane %v273_v49, 4  ;;  %v287_v60 = vshrl.u32 %v1465_v48, 16  ;;  %v290_v0 = vshll.u32 %v1465_v48, 16  ;;  %v1227_v12 = vld [vmem:[%s1430_s20 + $0xac] sm:$0x1]  ;;  %v1370_v18 = vld [vmem:[%s1771_s1] sm:$0xff]  }
  0x1e   : > { %748 = vrot.lane.b32.xlu0 %v1353_v41, %s1385_s23  ;;  %v252_v62 = vrot.slane %v251_v50, 4  ;;  %v278_v63 = vrot.slane %v276_v54, 5  ;;  %v296_v1 = vshll.u32 %v236_v53, 16  ;;  %v284_v4 = vrot.slane %v282_v59, 5  ;;  %v1489_v13 = vld [vmem:[%s1430_s20 + $0x8] sm:$0xf]  ;;  %1309 = vmatprep.subr.bf16.mxu0 %v1370_v18 }
  0x1f   : > { %v266_v3 = vrot.slane %v265_v57, 4  ;;  %v289_v5 = vrot.slane %v287_v60, 4  ;;  %v390_v6 = vrot.slane %v389_v43, 4  ;;  %v292_v10 = vrot.slane %v290_v0, 5  ;;  %v1233_v25 = vld [vmem:[%s1430_s20 + $0x10] sm:$0xf]  ;;  %1323 = vmatprep.subr.bf16.mxu1 %v1370_v18  ;;  %1310 = vmatpush3.bf16.msra.mxu0 %v1370_v18 }
  0x20   : > { %v257_v8 = vsel %vm1475_vm2, %v252_v62, %v256_v45  ;;  %v279_v9 = vor.u32 %v278_v63, %v275_v58  ;;  %v298_v11 = vrot.slane %v296_v1, 5  ;;  %v392_v15 = vshll.u32 %v1224_v61, 16  ;;  %v1507_v40 = vld [vmem:[%s1430_s20 + $0x18] sm:$0xf]  ;;  %1326 = vmatpush3.bf16.msra.mxu1 %v1370_v18  ;;  %v1515_v46 = vld [vmem:[%s1430_s20 + $0x20] sm:$0xf] }
  0x21   : > { %v271_v14 = vsel %vm1475_vm2, %v266_v3, %v270_v51  ;;  %v404_v16 = vrot.slane %v403_v44, 4  ;;  %v406_v17 = vshll.u32 %v1225_v2, 16  ;;  %v293_v22 = vor.u32 %v292_v10, %v289_v5  ;;  %v1371_v47 = vld [vmem:[%s1771_s1 + $0x8] sm:$0xff]   ;;  %v1249_v62 = vld [vmem:[%s1430_s20 + $0x14] sm:$0x1] }
  0x22   : > { %v1264_v20 = vcombine.low %v257_v8, %v271_v14  ;;  %v280_v21 = vrot.slane %v279_v9, 4  ;;  %v420_v23 = vshll.u32 %v1226_v7, 16  ;;  %v394_v27 = vrot.slane %v392_v15, 5  ;;  %v1248_v53 = vld [vmem:[%s1430_s20 + $0xc] sm:$0x1]  ;;  %1311 = vmatprep.subr.bf16.mxu0 %v1371_v47  ;;  %1324 = vmatprep.subr.bf16.mxu1 %v1371_v47 }
  0x23   : > { %v408_v28 = vrot.slane %v406_v17, 5  ;;  %v434_v29 = vshll.u32 %v1227_v12, 16  ;;  %v521_v30 = vshrl.u32 %v1489_v13, 16  ;;  %v294_v33 = vrot.slane %v293_v22, 4  ;;  %1312 = vmatpush3.bf16.msra.mxu0 %v1371_v47  ;;  %v1356_v2 = vld [vmem:[%s1430_s20 + $0x50] ss:$8 sps:$4 sm:$0xff]  }
  0x24   : > { %692 = vrot.lane.b32.xlu1 %v1264_v20, %s1386_s26  ;;  %v285_v32 = vsel %vm1475_vm2, %v280_v21, %v284_v4  ;;  %v422_v34 = vrot.slane %v420_v23, 5  ;;  %v524_v35 = vshll.u32 %v1489_v13, 16  ;;  %v395_v36 = vsel %vm1475_vm2, %v390_v6, %v394_v27  ;;  %v1250_v4 = vld [vmem:[%s1430_s20 + $0x1c] sm:$0x1]  ;;  %v1251_v5 = vld [vmem:[%s1430_s20 + $0x24] sm:$0x1]  ;;  %1327 = vmatpush3.bf16.msra.mxu1 %v1371_v47 }
  0x25   : > { %v409_v37 = vsel %vm1475_vm2, %v404_v16, %v408_v28  ;;  %v436_v38 = vrot.slane %v434_v29, 5  ;;  %v523_v39 = vrot.slane %v521_v30, 4  ;;  %v299_v41 = vsel %vm1475_vm2, %v294_v33, %v298_v11  ;;  %v1540_v22 = vld [vmem:[%s1430_s20 + $0x20] sm:$0xf]  ;;  %v1547_v29 = vld [vmem:[%s1430_s20 + $0x28] sm:$0xf] }
  0x26   : > { %v1276_v43 = vcombine.low %v395_v36, %v409_v37  ;;  %v423_v44 = vsel %vm1475_vm2, %v1454_v31, %v422_v34  ;;  %v526_v45 = vrot.slane %v524_v35, 5  ;;  %v1265_v49 = vcombine.low %v285_v32, %v299_v41  ;;  %v237_v30 = vld [vmem:[%s1430_s20 + $0x24] sm:$0x1]  ;;  %v238_v34 = vld [vmem:[%s1430_s20 + $0x2c] sm:$0x1] }
  0x27   : > { %v437_v50 = vsel %vm1475_vm2, %v1449_v26, %v436_v38  ;;  %v535_v51 = vshrl.u32 %v1233_v25, 16  ;;  %v538_v52 = vshll.u32 %v1233_v25, 16  ;;  %v1280_v54 = vcombine.low %v1489_v13, %v1233_v25  ;;  %v1559_v37 = vld [vmem:[%s1430_s20 + $0x30] sm:$0xf]  ;;  %v1357_v38 = vld [vmem:[%s1430_s20 + $0x60] ss:$8 sps:$4 sm:$0xff]  }
  0x28   : > { %768 = vrot.lane.b32.xlu0 %v1276_v43, %s1387_s29  ;;  %v1277_v31 = vcombine.low %v423_v44, %v437_v50  ;;  %v549_v57 = vshrl.u32 %v1507_v40, 16  ;;  %v552_v58 = vshll.u32 %v1507_v40, 16  ;;  %694 = vrot.lane.b32.xlu1 %v1265_v49, %s1386_s26  ;;  %v563_v60 = vshrl.u32 %v1515_v46, 16  ;;  %v239_v44 = vld [vmem:[%s1430_s20 + $0x34] sm:$0x1] }
  0x29   : > { %v537_v26 = vrot.slane %v535_v51, 4  ;;  %v540_v59 = vrot.slane %v538_v52, 5  ;;  %v566_v61 = vshll.u32 %v1515_v46, 16  ;;  %v1281_v1 = vcombine.low %v1507_v40, %v1515_v46  ;;  %v1569_v50 = vld [vmem:[%s1430_s20 + $0x38] sm:$0xf] }
  0x2a   : > { %v551_v63 = vrot.slane %v549_v57, 4  ;;  %v554_v0 = vrot.slane %v552_v58, 5  ;;  %v527_v3 = vor.u32 %v526_v45, %v523_v39  ;;  %v565_v6 = vrot.slane %v563_v60, 4  ;;  %v1576_v60 = vld [vmem:[%s1430_s20 + $0xb0] sm:$0xf] }
  0x2b   : > { %v568_v7 = vrot.slane %v566_v61, 5  ;;  %v530_v8 = vshll.u32 %v1248_v53, 16  ;;  %v541_v9 = vor.u32 %v540_v59, %v537_v26  ;;  %v544_v11 = vshll.u32 %v1249_v62, 16  ;;  %v1358_v61 = vld [vmem:[%s1430_s20 + $0x68] ss:$8 sps:$4 sm:$0xff]  }
  0x2c   : > { %796 = vrot.lane.b32.xlu0 %v1280_v54, %s1388_s30  ;;  %v528_v10 = vrot.slane %v527_v3, 4  ;;  %v555_v12 = vor.u32 %v554_v0, %v551_v63  ;;  %v558_v13 = vshll.u32 %v1250_v4, 16  ;;  %770 = vrot.lane.b32.xlu1 %v1277_v31, %s1387_s29  ;;  %v572_v17 = vshll.u32 %v1251_v5, 16  ;;  %v240_v31 = vld [vmem:[%s1430_s20 + $0x3c] sm:$0x1] }
  0x2d   : > { %v532_v14 = vrot.slane %v530_v8, 5  ;;  %v542_v15 = vrot.slane %v541_v9, 4  ;;  %v569_v16 = vor.u32 %v568_v7, %v565_v6  ;;  %v546_v18 = vrot.slane %v544_v11, 5  ;;  %v1213_v6 = vld [vmem:[%s1430_s20 + $0xb8] sm:$0xf] }
  0x2e   : > { %v556_v20 = vrot.slane %v555_v12, 4  ;;  %v560_v21 = vrot.slane %v558_v13, 5  ;;  %v1257_v23 = vcombine.low %v1462_v42, %v1465_v48  ;;  %v574_v28 = vrot.slane %v572_v17, 5  ;;  %v1359_v7 = vld [vmem:[%s1430_s20 + $0x78] ss:$8 sps:$4 sm:$0xff]  }
  0x2f   : > { %v533_v25 = vsel %vm1475_vm2, %v528_v10, %v532_v14  ;;  %v570_v27 = vrot.slane %v569_v16, 4  ;;  %v547_v32 = vsel %vm1475_vm2, %v542_v15, %v546_v18  ;;  %v301_v35 = vshrl.u32 %v1540_v22, 16  ;;  %v1586_v12 = vld [vmem:[%s1430_s20 + $0xc0] sm:$0xf]  ;;  %v1593_v17 = vld [vmem:[%s1430_s20 + $0xc8] sm:$0xf] }
  0x30   : > { %824 = vrot.lane.b32.xlu0 %v1356_v2, %s1389_s5  ;;  %v561_v33 = vsel %vm1475_vm2, %v556_v20, %v560_v21  ;;  %v304_v36 = vshll.u32 %v1540_v22, 16  ;;  %798 = vrot.lane.b32.xlu1 %v1281_v1, %s1388_s30  ;;  %v1288_v39 = vcombine.low %v533_v25, %v547_v32  ;;  %v310_v41 = vshll.u32 %v237_v30, 16 }
  0x31   : > { %v575_v40 = vsel %vm1475_vm2, %v570_v27, %v574_v28  ;;  %v315_v43 = vshrl.u32 %v1547_v29, 16  ;;  %v303_v46 = vrot.slane %v301_v35, 4  ;;  %v318_v49 = vshll.u32 %v1547_v29, 16 }
  0x32   : > { %v1289_v45 = vcombine.low %v561_v33, %v575_v40  ;;  %v306_v47 = vrot.slane %v304_v36, 5  ;;  %v312_v51 = vrot.slane %v310_v41, 5  ;;  %v324_v53 = vshll.u32 %v238_v34, 16 }
  0x33   : > { %v317_v52 = vrot.slane %v315_v43, 4  ;;  %v329_v54 = vshrl.u32 %v1559_v37, 16  ;;  %v320_v58 = vrot.slane %v318_v49, 5  ;;  %v332_v26 = vshll.u32 %v1559_v37, 16  ;;  %v1228_v43 = vld [vmem:[%s1430_s20 + $0xb4] sm:$0x1] }
  0x34   : > { %844 = vrot.lane.b32.xlu0 %v1288_v39, %s1390_s6  ;;  %v307_v57 = vor.u32 %v306_v47, %v303_v46  ;;  %v338_v59 = vshll.u32 %v239_v44, 16  ;;  %826 = vrot.lane.b32.xlu1 %v1357_v38, %s1389_s5  ;;  %v326_v62 = vrot.slane %v324_v53, 5  ;;  %v343_v0 = vshrl.u32 %v1569_v50, 16  ;;  %v1229_v49 = vld [vmem:[%s1430_s20 + $0xbc] sm:$0x1] }
  0x35   : > { %v331_v63 = vrot.slane %v329_v54, 4  ;;  %v346_v1 = vshll.u32 %v1569_v50, 16  ;;  %v321_v3 = vor.u32 %v320_v58, %v317_v52  ;;  %v334_v4 = vrot.slane %v332_v26, 5 }
  0x36   : > { %v308_v2 = vrot.slane %v307_v57, 4  ;;  %v340_v5 = vrot.slane %v338_v59, 5  ;;  %v345_v8 = vrot.slane %v343_v0, 4  ;;  %v352_v10 = vshll.u32 %v240_v31, 16  ;;  %v1231_v57 = vld [vmem:[%s1430_s20 + $0xcc] sm:$0x1] }
  0x37   : > { %v348_v9 = vrot.slane %v346_v1, 5  ;;  %v439_v11 = vshrl.u32 %v1576_v60, 16  ;;  %v322_v14 = vrot.slane %v321_v3, 4  ;;  %v335_v15 = vor.u32 %v334_v4, %v331_v63  ;;  %v1362_v59 = vld [vmem:[%s1430_s20 + $0xf8] ss:$8 sps:$4 sm:$0xff]  }
  0x38   : > { %846 = vrot.lane.b32.xlu0 %v1289_v45, %s1390_s6  ;;  %v313_v13 = vsel %vm1475_vm2, %v308_v2, %v312_v51  ;;  %v442_v16 = vshll.u32 %v1576_v60, 16  ;;  %676 = vrot.lane.b32.xlu1 %v1358_v61, %s1383_s21  ;;  %v354_v20 = vrot.slane %v352_v10, 5  ;;  %v453_v25 = vshrl.u32 %v1213_v6, 16  ;;  %v1230_v51 = vld [vmem:[%s1430_s20 + $0xc4] sm:$0x1] }
  0x39   : > { %v349_v18 = vor.u32 %v348_v9, %v345_v8  ;;  %v441_v21 = vrot.slane %v439_v11, 4  ;;  %v327_v27 = vsel %vm1475_vm2, %v322_v14, %v326_v62  ;;  %v336_v28 = vrot.slane %v335_v15, 4  ;;  %v1617_v62 = vld [vmem:[%s1430_s20 + $0x28] sm:$0xf]  ;;  %v1237_v3 = vld [vmem:[%s1430_s20 + $0x30] sm:$0xf] }
  0x3a   : > { %v444_v30 = vrot.slane %v442_v16, 5  ;;  %v456_v32 = vshll.u32 %v1213_v6, 16  ;;  %v1266_v33 = vcombine.low %v313_v13, %v327_v27  ;;  %v455_v35 = vrot.slane %v453_v25, 4  ;;  %v1623_v8 = vld [vmem:[%s1430_s20 + $0x38] sm:$0xf] }
  0x3b   : > { %v350_v34 = vrot.slane %v349_v18, 4  ;;  %v1270_v36 = vcombine.low %v1576_v60, %v1213_v6  ;;  %v341_v38 = vsel %vm1475_vm2, %v336_v28, %v340_v5  ;;  %v467_v40 = vshrl.u32 %v1586_v12, 16  ;;  %v1363_v27 = vld [vmem:[%s1430_s20 + $0x108] ss:$8 sps:$4 sm:$0xff]  }
  0x3c   : > { %v458_v39 = vrot.slane %v456_v32, 5  ;;  %v470_v41 = vshll.u32 %v1586_v12, 16  ;;  %678 = vrot.lane.b32.xlu1 %v1359_v7, %s1383_s21  ;;  %696 = vrot.lane.b32.xlu0 %v1266_v33, %s1386_s26  ;;  %v481_v45 = vshrl.u32 %v1593_v17, 16  ;;  %v484_v46 = vshll.u32 %v1593_v17, 16 }
  0x3d   : > { %v355_v44 = vsel %vm1475_vm2, %v350_v34, %v354_v20  ;;  %v1271_v47 = vcombine.low %v1586_v12, %v1593_v17  ;;  %v469_v53 = vrot.slane %v467_v40, 4  ;;  %v445_v54 = vor.u32 %v444_v30, %v441_v21  ;;  %v1239_v17 = vld [vmem:[%s1430_s20 + $0x40] sm:$0xf]  ;;  %v1252_v34 = vld [vmem:[%s1430_s20 + $0x2c] sm:$0x1] }
  0x3e   : > { %v1267_v52 = vcombine.low %v341_v38, %v355_v44  ;;  %v472_v31 = vrot.slane %v470_v41, 5  ;;  %v483_v58 = vrot.slane %v481_v45, 4  ;;  %v486_v26 = vrot.slane %v484_v46, 5  ;;  %v1254_v45 = vld [vmem:[%s1430_s20 + $0x3c] sm:$0x1] }
  0x3f   : > { %v448_v60 = vshll.u32 %v1228_v43, 16  ;;  %v459_v61 = vor.u32 %v458_v39, %v455_v35  ;;  %v446_v63 = vrot.slane %v445_v54, 4  ;;  %v462_v0 = vshll.u32 %v1229_v49, 16  ;;  %v1253_v39 = vld [vmem:[%s1430_s20 + $0x34] sm:$0x1] }
  0x40   : > { %v473_v1 = vor.u32 %v472_v31, %v469_v53  ;;  %v476_v2 = vshll.u32 %v1230_v51, 16  ;;  %698 = vrot.lane.b32.xlu1 %v1267_v52, %s1386_s26  ;;  %724 = vrot.lane.b32.xlu0 %v1270_v36, %s1384_s22  ;;  %v487_v6 = vor.u32 %v486_v26, %v483_v58  ;;  %v490_v7 = vshll.u32 %v1231_v57, 16  ;;  %v1255_v52 = vld [vmem:[%s1430_s20 + $0x44] sm:$0x1] }
  0x41   : > { %v450_v4 = vrot.slane %v448_v60, 5  ;;  %v460_v5 = vrot.slane %v459_v61, 4  ;;  %v464_v9 = vrot.slane %v462_v0, 5  ;;  %v577_v12 = vshrl.u32 %v1617_v62, 16 }
  0x42   : > { %v474_v10 = vrot.slane %v473_v1, 4  ;;  %v478_v11 = vrot.slane %v476_v2, 5  ;;  %v488_v14 = vrot.slane %v487_v6, 4  ;;  %v492_v15 = vrot.slane %v490_v7, 5 }
  0x43   : > { %v451_v13 = vsel %vm1475_vm2, %v446_v63, %v450_v4  ;;  %v580_v16 = vshll.u32 %v1617_v62, 16  ;;  %v465_v18 = vsel %vm1475_vm2, %v460_v5, %v464_v9  ;;  %v579_v21 = vrot.slane %v577_v12, 4  ;;  %v1373_v6 = vld [vmem:[%s1771_s1 + $0x10] ss:$0 sps:$4 sm:$0x33]  }
  0x44   : > { %v479_v20 = vsel %vm1475_vm2, %v474_v10, %v478_v11  ;;  %v591_v25 = vshrl.u32 %v1237_v3, 16  ;;  %726 = vrot.lane.b32.xlu1 %v1271_v47, %s1384_s22  ;;  %752 = vrot.lane.b32.xlu0 %v1362_v59, %s1385_s23  ;;  %v1278_v28 = vcombine.low %v451_v13, %v465_v18  ;;  %v493_v30 = vsel %vm1475_vm2, %v488_v14, %v492_v15 }
  0x45   : > { %v582_v32 = vrot.slane %v580_v16, 5  ;;  %v594_v33 = vshll.u32 %v1237_v3, 16  ;;  %v1279_v35 = vcombine.low %v479_v20, %v493_v30  ;;  %v605_v38 = vshrl.u32 %v1623_v8, 16  ;;  %1329 = vmatprep.subr.msk.bf16.mxu0 %vm957_vm3, %v1373_v6  ;;  %1330 = vmatprep.subr.msk.bf16.mxu1 %vm957_vm3, %v1373_v6 }
  0x46   : > { %v593_v36 = vrot.slane %v591_v25, 4  ;;  %v608_v41 = vshll.u32 %v1623_v8, 16  ;;  %v619_v43 = vshrl.u32 %v1239_v17, 16  ;;  %v622_v44 = vshll.u32 %v1239_v17, 16 }
  0x47   : > { %v596_v40 = vrot.slane %v594_v33, 5  ;;  %v1282_v46 = vcombine.low %v1617_v62, %v1237_v3  ;;  %v607_v47 = vrot.slane %v605_v38, 4  ;;  %v583_v49 = vor.u32 %v582_v32, %v579_v21  ;;  %v1366_v3 = vld [vmem:[%s1430_s20 + $0x70] ss:$8 sps:$4 sm:$0xff]  }
  0x48   : > { %v586_v51 = vshll.u32 %v1252_v34, 16  ;;  %754 = vrot.lane.b32.xlu1 %v1363_v27, %s1385_s23  ;;  %772 = vrot.lane.b32.xlu0 %v1278_v28, %s1387_s29  ;;  %v610_v53 = vrot.slane %v608_v41, 5  ;;  %v621_v31 = vrot.slane %v619_v43, 4  ;;  %v624_v54 = vrot.slane %v622_v44, 5 }
  0x49   : > { %v597_v57 = vor.u32 %v596_v40, %v593_v36  ;;  %v584_v58 = vrot.slane %v583_v49, 4  ;;  %v600_v59 = vshll.u32 %v1253_v39, 16  ;;  %v614_v60 = vshll.u32 %v1254_v45, 16 }
  0x4a   : > { %v588_v26 = vrot.slane %v586_v51, 5  ;;  %v611_v63 = vor.u32 %v610_v53, %v607_v47  ;;  %v625_v62 = vor.u32 %v624_v54, %v621_v31  ;;  %v628_v0 = vshll.u32 %v1255_v52, 16 }
  0x4b   : > { %v598_v61 = vrot.slane %v597_v57, 4  ;;  %v602_v1 = vrot.slane %v600_v59, 5  ;;  %v1283_v2 = vcombine.low %v1623_v8, %v1239_v17  ;;  %v616_v5 = vrot.slane %v614_v60, 5  ;;  %v1367_v8 = vld [vmem:[%s1430_s20 + $0x80] ss:$8 sps:$4 sm:$0xff]   ;;  %s214_s20 = scalar_lea.vmem %s1774_s4, %s1778_s16 }
  0x4c   : > { %774 = vrot.lane.b32.xlu1 %v1279_v35, %s1387_s29  ;;  %800 = vrot.lane.b32.xlu0 %v1282_v46, %s1388_s30  ;;  %v589_v4 = vsel %vm1475_vm2, %v584_v58, %v588_v26  ;;  %v612_v9 = vrot.slane %v611_v63, 4  ;;  %v626_v10 = vrot.slane %v625_v62, 4  ;;  %v630_v11 = vrot.slane %v628_v0, 5 }
  0x4d   : > { %v603_v7 = vsel %vm1475_vm2, %v598_v61, %v602_v1  ;;  %v1258_v12 = vcombine.low %v1540_v22, %v1547_v29  ;;  %v959_v14 = vsel %vm957_vm3, %v1373_v6, 0  ;;  %v1259_v15 = vcombine.low %v1559_v37, %v1569_v50 }
  0x4e   : > { %v1290_v13 = vcombine.low %v589_v4, %v603_v7  ;;  %v617_v16 = vsel %vm1475_vm2, %v612_v9, %v616_v5  ;;  %v631_v17 = vsel %vm1475_vm2, %v626_v10, %v630_v11  ;;  %1314 = vmatpush3.bf16.msra.mxu0 %v959_v14  ;;  %1328 = vmatpush3.bf16.msra.mxu1 %v959_v14 }
  0x4f   : > { %v1291_v18 = vcombine.low %v617_v16, %v631_v17 }
  0x50   : > { %802 = vrot.lane.b32.xlu1 %v1283_v2, %s1388_s30  ;;  %828 = vrot.lane.b32.xlu0 %v1366_v3, %s1389_s5 }
  0x54   : > { %830 = vrot.lane.b32.xlu1 %v1367_v8, %s1389_s5  ;;  %848 = vrot.lane.b32.xlu0 %v1290_v13, %s1390_s6 }
  0x58   : > { %850 = vrot.lane.b32.xlu1 %v1291_v18, %s1390_s6 }
  0x84   : > { %v673_v20 = vpop.permute.xlu0 %672 }
  0x85   : > { %v855_v34 = vsel %vm852_vm4, %v1256_v55, %v673_v20 }
  0x87   : > { %v723_v25 = vpop.permute.xlu1 %722 }
  0x88   : > { %v675_v21 = vpop.permute.xlu0 %674 }
  0x89   : > { %v858_v36 = vsel %vm852_vm4, %v1257_v23, %v675_v21 }
  0x8b   : > { %v751_v28 = vpop.permute.xlu1 %750 }
  0x8c   : > { %v721_v27 = vpop.permute.xlu0 %720 }
  0x90   : > { %v749_v30 = vpop.permute.xlu0 %748 }
  0x96   : > { %v693_v32 = vpop.permute.xlu1 %692 }
  0x97   : > { %v867_v35 = vsel %vm865_vm5, %v855_v34, %v693_v32 }
  0x98   : > { %v876_v41 = vsel %vm874_vm6, %v867_v35, %v721_v27 }
  0x99   : > { %v885_v55 = vsel %vm883_vm7, %v876_v41, %v749_v30 }
  0x9a   : > { %v769_v56 = vpop.permute.xlu0 %768  ;;  %v695_v33 = vpop.permute.xlu1 %694 }
  0x9b   : > { %v869_v39 = vsel %vm865_vm5, %v858_v36, %v695_v33  ;;  %v894_v42 = vsel %vm892_vm8, %v885_v55, %v769_v56 }
  0x9c   : > { %v878_v19 = vsel %vm874_vm6, %v869_v39, %v723_v25 }
  0x9d   : > { %v887_v48 = vsel %vm883_vm7, %v878_v19, %v751_v28 }
  0x9e   : > { %v797_v38 = vpop.permute.xlu0 %796  ;;  %v771_v40 = vpop.permute.xlu1 %770 }
  0x9f   : > { %v903_v23 = vsel %vm901_vm9, %v894_v42, %v797_v38  ;;  %v896_v49 = vsel %vm892_vm8, %v887_v48, %v771_v40 }
  0xa2   : > { %v825_v24 = vpop.permute.xlu0 %824  ;;  %v799_v43 = vpop.permute.xlu1 %798 }
  0xa3   : > { %v912_v44 = vsel %vm910_vm10, %v903_v23, %v825_v24  ;;  %v905_v51 = vsel %vm901_vm9, %v896_v49, %v799_v43 }
  0xa6   : > { %v845_v45 = vpop.permute.xlu0 %844  ;;  %v827_v46 = vpop.permute.xlu1 %826 }
  0xa7   : > { %v921_v47 = vsel %vm919_vm11, %v912_v44, %v845_v45  ;;  %v914_v52 = vsel %vm910_vm10, %v905_v51, %v827_v46 }
  0xa8   : > { %1315 = vmatprep.mubr.msk.bf16.mxu0 %vm948_vm12, %v921_v47 }
  0xaa   : > { %v847_v53 = vpop.permute.xlu0 %846  ;;  %v677_v31 = vpop.permute.xlu1 %676 }
  0xab   : > { %v923_v54 = vsel %vm919_vm11, %v914_v52, %v847_v53  ;;  %v861_v2 = vsel %vm852_vm4, %v1258_v12, %v677_v31 }
  0xac   : > { %1316 = vmatmul.mubr.msk.bf16.vlgmr.msra.gmra.mrb[0].mxu0 %vm948_vm12, %v923_v54 }
  0xae   : > { %v679_v57 = vpop.permute.xlu1 %678  ;;  %v697_v58 = vpop.permute.xlu0 %696 }
  0xaf   : > { %v871_v3 = vsel %vm865_vm5, %v861_v2, %v697_v58  ;;  %v864_v9 = vsel %vm852_vm4, %v1259_v15, %v679_v57 }
  0xb2   : > { %v699_v26 = vpop.permute.xlu1 %698  ;;  %v725_v59 = vpop.permute.xlu0 %724 }
  0xb3   : > { %v880_v4 = vsel %vm874_vm6, %v871_v3, %v725_v59  ;;  %v873_v22 = vsel %vm865_vm5, %v864_v9, %v699_v26 }
  0xb6   : > { %v727_v60 = vpop.permute.xlu1 %726  ;;  %v753_v61 = vpop.permute.xlu0 %752 }
  0xb7   : > { %v889_v7 = vsel %vm883_vm7, %v880_v4, %v753_v61  ;;  %v882_v11 = vsel %vm874_vm6, %v873_v22, %v727_v60 }
  0xba   : > { %v755_v63 = vpop.permute.xlu1 %754  ;;  %v773_v62 = vpop.permute.xlu0 %772 }
  0xbb   : > { %v898_v10 = vsel %vm892_vm8, %v889_v7, %v773_v62  ;;  %v891_v14 = vsel %vm883_vm7, %v882_v11, %v755_v63 }
  0xbe   : > { %v775_v0 = vpop.permute.xlu1 %774  ;;  %v801_v1 = vpop.permute.xlu0 %800 }
  0xbf   : > { %v907_v29 = vsel %vm901_vm9, %v898_v10, %v801_v1  ;;  %v900_v37 = vsel %vm892_vm8, %v891_v14, %v775_v0 }
  0xc2   : > { %v803_v5 = vpop.permute.xlu1 %802  ;;  %v829_v6 = vpop.permute.xlu0 %828 }
  0xc3   : > { %v916_v12 = vsel %vm910_vm10, %v907_v29, %v829_v6  ;;  %v909_v50 = vsel %vm901_vm9, %v900_v37, %v803_v5 }
  0xc6   : > { %v831_v8 = vpop.permute.xlu1 %830  ;;  %v849_v13 = vpop.permute.xlu0 %848 }
  0xc7   : > { %v925_v16 = vsel %vm919_vm11, %v916_v12, %v849_v13  ;;  %v918_v15 = vsel %vm910_vm10, %v909_v50, %v831_v8 }
  0xc8   : > { %1319 = vmatprep.mubr.msk.bf16.mxu1 %vm948_vm12, %v925_v16 }
  0xca   : > { %v851_v17 = vpop.permute.xlu1 %850 }
  0xcb   : > { %v927_v18 = vsel %vm919_vm11, %v918_v15, %v851_v17 }
  0xcc   : > { %1320 = vmatmul.mubr.msk.bf16.vlgmr.msra.gmra.mrb[0].mxu1 %vm948_vm12, %v927_v18 }
 0x17f   : > { %v1317_v20 = vpop.f32.mrb[0].mxu0 }
 0x180   : > { %1028 = vst.msk [vmem:[%s1725_s12 + $0x10] sm:$0xff] %vm919_vm11, %v1317_v20  ;;  %v995_v21 = vpop.f32.mrb[1].mxu0  ;;  %v1059_v30 = vmul.f32 %v1317_v20, %v1317_v20  ;;  %v1037_v35 = vsel %vm919_vm11, %v1317_v20, 0.0 }
 0x181   : > { %1026 = vst.msk [vmem:[%s1725_s12] sm:$0xff] %vm919_vm11, %v995_v21  ;;  %v1057_v25 = vmul.f32 %v995_v21, %v995_v21  ;;  %v1318_v27 = vpop.f32.mrb[2].mxu0  ;;  %v1034_v32 = vsel %vm919_vm11, %v995_v21, 0.0 }
 0x182   : > { %1029 = vst.msk [vmem:[%s1725_s12 + $0x18] sm:$0xff] %vm919_vm11, %v1318_v27  ;;  %v998_v28 = vpop.f32.mrb[3].mxu0  ;;  %v1060_v38 = vmul.f32 %v1318_v27, %v1318_v27  ;;  %v1068_v19 = vsel %vm919_vm11, %v1059_v30, 0.0  ;;  %v1039_v24 = vsel %vm919_vm11, %v1318_v27, 0.0 }
 0x183   : > { %1027 = vst.msk [vmem:[%s1725_s12 + $0x8] sm:$0xff] %vm919_vm11, %v998_v28  ;;  %v1035_v56 = vsel %vm919_vm11, %v998_v28, 0.0  ;;  %v1058_v33 = vmul.f32 %v998_v28, %v998_v28  ;;  %v1065_v36 = vsel %vm919_vm11, %v1057_v25, 0.0 }
 0x184   : > { %v1036_v34 = vadd.f32 %v1035_v56, %v1034_v32  ;;  %v1070_v42 = vsel %vm919_vm11, %v1060_v38, 0.0 }
 0x185   : > { %v1066_v39 = vsel %vm919_vm11, %v1058_v33, 0.0 }
 0x186   : > { %v1038_v40 = vadd.f32 %v1037_v35, %v1036_v34  ;;  %v1067_v41 = vadd.f32 %v1066_v39, %v1065_v36 }
 0x188   : > { %v1069_v55 = vadd.f32 %v1068_v19, %v1067_v41  ;;  %v1040_v43 = vadd.f32 %v1039_v24, %v1038_v40 }
 0x18a   : > { %v1071_v48 = vadd.f32 %v1070_v42, %v1069_v55 }
 0x19f   : > { %v1321_v23 = vpop.f32.mrb[0].mxu1 }
 0x1a0   : > { %1032 = vst.msk [vmem:[%s1725_s12 + $0x30] sm:$0xff] %vm919_vm11, %v1321_v23  ;;  %v1011_v44 = vpop.f32.mrb[1].mxu1  ;;  %v1063_v52 = vmul.f32 %v1321_v23, %v1321_v23  ;;  %v1045_v26 = vsel %vm919_vm11, %v1321_v23, 0.0 }
 0x1a1   : > { %1030 = vst.msk [vmem:[%s1725_s12 + $0x20] sm:$0xff] %vm919_vm11, %v1011_v44  ;;  %v1041_v45 = vsel %vm919_vm11, %v1011_v44, 0.0  ;;  %v1061_v46 = vmul.f32 %v1011_v44, %v1011_v44  ;;  %v1322_v47 = vpop.f32.mrb[2].mxu1 }
 0x1a2   : > { %v1042_v49 = vadd.f32 %v1041_v45, %v1040_v43  ;;  %1033 = vst.msk [vmem:[%s1725_s12 + $0x38] sm:$0xff] %vm919_vm11, %v1322_v47  ;;  %v1014_v51 = vpop.f32.mrb[3].mxu1  ;;  %v1064_v59 = vmul.f32 %v1322_v47, %v1322_v47  ;;  %v1076_v62 = vsel %vm919_vm11, %v1063_v52, 0.0  ;;  %v1047_v0 = vsel %vm919_vm11, %v1322_v47, 0.0 }
 0x1a3   : > { %v1072_v53 = vsel %vm919_vm11, %v1061_v46, 0.0  ;;  %1031 = vst.msk [vmem:[%s1725_s12 + $0x28] sm:$0xff] %vm919_vm11, %v1014_v51  ;;  %v1043_v31 = vsel %vm919_vm11, %v1014_v51, 0.0  ;;  %v1062_v54 = vmul.f32 %v1014_v51, %v1014_v51 }
 0x1a4   : > { %v1073_v57 = vadd.f32 %v1072_v53, %v1071_v48  ;;  %v1044_v58 = vadd.f32 %v1043_v31, %v1042_v49  ;;  %v1078_v3 = vsel %vm919_vm11, %v1064_v59, 0.0 }
 0x1a5   : > { %v1074_v60 = vsel %vm919_vm11, %v1062_v54, 0.0 }
 0x1a6   : > { %v1046_v61 = vadd.f32 %v1045_v26, %v1044_v58  ;;  %v1075_v63 = vadd.f32 %v1074_v60, %v1073_v57 }
 0x1a8   : > { %v1048_v1 = vadd.f32 %v1047_v0, %v1046_v61  ;;  %v1077_v2 = vadd.f32 %v1076_v62, %v1075_v63 }
 0x1aa   : > { %v1049_v4 = vrot.slane %v1048_v1, 4  ;;  %v1079_v5 = vadd.f32 %v1078_v3, %v1077_v2 }
 0x1ac   : > { %v1050_v6 = vadd.f32 %v1049_v4, %v1048_v1  ;;  %v1080_v7 = vrot.slane %v1079_v5, 4 }
 0x1ae   : > { %v1051_v9 = vrot.slane %v1050_v6, 2  ;;  %v1081_v10 = vadd.f32 %v1080_v7, %v1079_v5 }
 0x1b0   : > { %v1052_v22 = vadd.f32 %v1051_v9, %v1050_v6  ;;  %v1082_v29 = vrot.slane %v1081_v10, 2 }
 0x1b2   : > { %v1053_v11 = vrot.slane %v1052_v22, 1  ;;  %v1083_v12 = vadd.f32 %v1082_v29, %v1081_v10 }
 0x1b4   : > { %v1054_v8 = vadd.f32 %v1053_v11, %v1052_v22  ;;  %v1084_v13 = vrot.slane %v1083_v12, 1 }
 0x1b6   : > { %1056 = vst.msk [vmem:[%s211_s17] sm:$0x1] %vm1055_vm13, %v1054_v8  ;;  %v1085_v14 = vadd.f32 %v1084_v13, %v1083_v12 }
 0x1b8   : > { %1086 = vst.msk [vmem:[%s214_s20] sm:$0x1] %vm1055_vm13, %v1085_v14 }
 0x1b9 PF: > { %s15_s15 = sadd.s32 1, %s1381_s15  }
 0x1ba   : > { %p12_p4 = scmp.ge.s32.totalorder %s15_s15, 4  }
 0x1bc   :  { %14 = sbr.rel (!%p12_p4) target bundleno = 1 (0x1), region = 87 }

</bundles_post_ra>
